<compile_context>
chip_gen: v7x
topology: tpu7x:2x2x1
jax: 0.10.0
libtpu: 0.0.40
codegen_flags: <defaults>
</compile_context>

<pallas_src>
import functools

import jax
import jax.numpy as jnp
from jax.experimental import pallas as pl
from jax.experimental.pallas import tpu as pltpu


# ----------------------------------------------------------------------------- kernel
def _ffn_kernel(x_ref, w1t_ref, w3t_ref, w2t_ref, o_ref,
                swish_buf, xv_acc, out_acc):
    """Two-phase hidden-dim streaming kernel.

    Grid = (M//tm, 2, Kt); iteration order i -> p -> t.
      phase p=0, tile t: h1 = x @ W1^T[:, t*tk:(t+1)*tk]          (MXU, f32 acc)
                         sw = silu(h1)                            (EUP + VPU)
                         swish_buf[:, tile] = sw
                         xv_acc += sw @ W3^T[tile, :]              (MXU, f32 acc)
      phase p=1, tile t: gated = swish_buf[:, tile] * xv_acc[:, tile]
                         out_acc += gated @ W2^T[tile, :]          (MXU, f32 acc)
                         (last t) o_ref <- out_acc
    """
    p = pl.program_id(1)
    t = pl.program_id(2)
    nt = pl.num_programs(2)
    tk = w1t_ref.shape[1]
    w_dtype = w1t_ref.dtype
    off = pl.multiple_of(t * tk, tk)

    @pl.when((p == 0) & (t == 0))
    def _init_xv():
        xv_acc[...] = jnp.zeros_like(xv_acc)

    @pl.when(p == 0)
    def _phase0():
        # 1) h1 tile = x @ W1^T tile -- native-dtype operands, f32 accumulation.
        h1 = jnp.dot(x_ref[...], w1t_ref[...],
                     preferred_element_type=jnp.float32)              # (tm, tk)
        # 2) SiLU in f32 (sigmoid rides the EUP slot, mul rides the VALU).
        sw = h1 * jax.nn.sigmoid(h1)
        # Keep the f32 swish for exact f32-path gating in phase 1; the MXU
        # operand below is cast once to the weight dtype.
        swish_buf[:, pl.ds(off, tk)] = sw
        # 3) partial x_V: contract this hidden tile against W3^T row tile.
        xv_acc[...] += jnp.dot(sw.astype(w_dtype), w3t_ref[...],
                               preferred_element_type=jnp.float32)    # (tm, H)

    @pl.when((p == 1) & (t == 0))
    def _init_out():
        out_acc[...] = jnp.zeros_like(out_acc)

    @pl.when(p == 1)
    def _phase1():
        # 4) gating in f32, 5) partial out = gated @ W2^T row tile.
        gated = swish_buf[:, pl.ds(off, tk)] * xv_acc[:, pl.ds(off, tk)]
        out_acc[...] += jnp.dot(gated.astype(w_dtype), w2t_ref[...],
                                preferred_element_type=jnp.float32)   # (tm, D)

    @pl.when((p == 1) & (t == nt - 1))
    def _store():
        o_ref[...] = out_acc[...].astype(o_ref.dtype)


# ----------------------------------------------------------------------------- sizing
def _vmem_budget_bytes():
    """Generation-aware ceiling for the scoped-VMEM request."""
    try:
        cap = int(pltpu.get_tpu_info().vmem_capacity_bytes)
    except Exception:
        cap = 64 << 20  # conservative fallback (v7x-sized)
    if cap >= (120 << 20):      # v5e / v6e: 128 MiB physical
        return 100 << 20
    return int(cap * 0.75)      # v7x: 64 MiB physical -> ~48 MiB


def _footprint_bytes(tm, tk, D, H, x_item, w_item, o_item):
    b = 2 * tm * D * x_item          # x tile, double-buffered
    b += 2 * tm * D * o_item         # out tile, double-buffered
    b += 2 * D * tk * w_item         # W1^T column tile, double-buffered
    b += 2 * tk * H * w_item         # W3^T row tile, double-buffered
    b += 2 * tk * D * w_item         # W2^T row tile, double-buffered
    b += tm * H * 4                  # swish scratch (f32)
    b += tm * H * 4                  # x_V accumulator (f32)
    b += tm * D * 4                  # output accumulator (f32)
    return b


def _pick_tm(M, dtype, vmem_budget):
    # dtype-aware sublane packing: f32 -> 8 rows/vreg, bf16 -> 16, int8/fp8 -> 32.
    itemsize = jnp.dtype(dtype).itemsize
    min_rows = {4: 8, 2: 16, 1: 32}.get(itemsize, 8)
    cands = (256, 128, 64, 32, 16, 8)
    # Big-VMEM generations (v5e/v6e) + large M: bigger tiles amortize the
    # ~0.35us/step grid overhead.  v7x keeps 256 to protect its 64 MiB VMEM.
    if vmem_budget >= (90 << 20) and M >= 2048:
        cands = (512,) + cands
    if M < min_rows:
        return M                     # full-extent block is always legal
    for cand in cands:
        if cand >= min_rows and M % cand == 0:
            return cand
    return M


def _pick_tk(H, budget, tm, D, x_item, w_item, o_item):
    # Largest hidden-dim tile (multiple of 128 dividing H, or the whole H)
    # whose double-buffered footprint fits the budget.  tk == H means no
    # streaming (weights fully resident, DMA'd once).
    cands = [H] + [c for c in (2048, 1024, 512, 256, 128)
                   if c < H and H % c == 0]
    for tk in cands:
        if _footprint_bytes(tm, tk, D, H, x_item, w_item, o_item) <= budget:
            return tk
    # TODO(synk): if even tk=128 does not fit (extreme dims), also shrink tm.
    return cands[-1]


# ----------------------------------------------------------------------------- builder
@functools.lru_cache(maxsize=None)
def _build_ffn_call(M, D, H, tm, tk, x_dtype_name, w_dtype_name, out_dtype_name,
                    vmem_limit):
    x_dtype = jnp.dtype(x_dtype_name)
    w_dtype = jnp.dtype(w_dtype_name)
    out_dtype = jnp.dtype(out_dtype_name)
    kt = H // tk
    last = kt - 1

    # In the phase where a weight is unused its index_map holds the last-used
    # tile, so Pallas elides the redundant DMA (unchanged block index).
    w1_map = lambda i, p, t: (0, jnp.where(p == 0, t, last))
    w3_map = lambda i, p, t: (jnp.where(p == 0, t, last), 0)
    w2_map = lambda i, p, t: (jnp.where(p == 0, 0, t), 0)

    cost = pl.CostEstimate(
        flops=2 * M * (D * H + H * H + H * D),
        transcendentals=M * H,
        bytes_accessed=(D * H + H * H + H * D) * w_dtype.itemsize
                       + M * D * x_dtype.itemsize
                       + M * D * out_dtype.itemsize,
    )

    return pl.pallas_call(
        _ffn_kernel,
        out_shape=jax.ShapeDtypeStruct((M, D), out_dtype),
        grid_spec=pltpu.PrefetchScalarGridSpec(
            num_scalar_prefetch=0,
            grid=(M // tm, 2, kt),
            in_specs=[
                pl.BlockSpec((tm, D), lambda i, p, t: (i, 0)),   # x token tile
                pl.BlockSpec((D, tk), w1_map),                   # W1^T column tile
                pl.BlockSpec((tk, H), w3_map),                   # W3^T row tile
                pl.BlockSpec((tk, D), w2_map),                   # W2^T row tile
            ],
            out_specs=pl.BlockSpec((tm, D), lambda i, p, t: (i, 0)),
            scratch_shapes=[
                pltpu.VMEM((tm, H), jnp.float32),    # swish (f32, exact gating)
                pltpu.VMEM((tm, H), jnp.float32),    # x_V accumulator
                pltpu.VMEM((tm, D), jnp.float32),    # output accumulator
            ],
        ),
        compiler_params=pltpu.CompilerParams(
            dimension_semantics=("parallel", "arbitrary", "arbitrary"),
            vmem_limit_bytes=vmem_limit),
        cost_estimate=cost,
    )


# ----------------------------------------------------------------------------- API
def ffn_prepare(w1, w2, w3):
    """Pre-transpose PyTorch-layout Linear weights ONCE (hoisted out of the hot
    path).  w1, w3: (H, D); w2: (D, H).  Returns (w1t, w3t, w2t) laid out as
    (in, out) so the kernel does plain x @ Wt."""
    H, D = w1.shape
    assert w3.shape == (H, D) and w2.shape == (D, H)
    assert H == D, "forward() applies w3 to swish => requires hidden_dim == dim"
    return jnp.asarray(w1).T, jnp.asarray(w3).T, jnp.asarray(w2).T


def ffn_apply(x, w1t, w3t, w2t, *, tm=None, tk=None):
    """x: (..., D) with prepared weights from ffn_prepare.  jit-friendly: no
    host sync, no per-call transposes, no exception-driven fallbacks."""
    D, H = w1t.shape
    assert w3t.shape == (H, H) and w2t.shape == (H, D)
    assert w1t.dtype == w3t.dtype == w2t.dtype, "weights must share a dtype"
    assert x.shape[-1] == D

    M = 1
    for s in x.shape[:-1]:
        M *= s
    x2 = x.reshape(M, D)

    x_item = jnp.dtype(x.dtype).itemsize
    w_item = jnp.dtype(w1t.dtype).itemsize
    o_item = x_item

    budget = _vmem_budget_bytes()
    if tm is None:
        tm = _pick_tm(M, x.dtype, budget)
    assert M % tm == 0, f"tm={tm} must divide M={M}"

    if tk is None:
        tk = _pick_tk(H, int(0.7 * budget), tm, D, x_item, w_item, o_item)
    if H % tk != 0:
        tk = H
    assert tk == H or tk % 128 == 0, "streaming tile must be lane-aligned"

    foot = _footprint_bytes(tm, tk, D, H, x_item, w_item, o_item)
    vmem_limit = min(budget, max(32 << 20, int(1.3 * foot) + (4 << 20)))

    call = _build_ffn_call(M, D, H, tm, tk,
                           jnp.dtype(x.dtype).name,
                           jnp.dtype(w1t.dtype).name,
                           jnp.dtype(x.dtype).name,
                           vmem_limit)
    out2 = call(x2, w1t, w3t, w2t)
    return out2.reshape(x.shape)


def feedforward_pallas(x, w1, w2, w3, *, tm=None, tk=None):
    """One-shot convenience taking PyTorch-layout weights.  For production,
    call ffn_prepare() once at load time and reuse its result with ffn_apply()."""
    w1t, w3t, w2t = ffn_prepare(w1, w2, w3)
    return ffn_apply(x, w1t, w3t, w2t, tm=tm, tk=tk)


def _reference(x, w1, w2, w3):
    swish = jax.nn.silu(x @ w1.T)
    x_v = swish @ w3.T
    return (swish * x_v) @ w2.T


# ----------------------------------------------------------------------------- test
if __name__ == "__main__":
    # Modelargs(dim=256, multiple_of=256, ffn_dim_multiplier=1.0)
    #   => hidden_dim = int(1.0 * 256) = 256 (== dim, the only shape-valid config).
    dim = 256
    hidden_dim = 256
    B, S = 2, 8

    key = jax.random.PRNGKey(0)
    kx, k1, k2, k3 = jax.random.split(key, 4)

    x = jax.random.normal(kx, (B, S, dim), dtype=jnp.float32)
    # nn.Linear(in, out, bias=False).weight has shape (out, in)
    w1 = jax.random.normal(k1, (hidden_dim, dim), dtype=jnp.float32) * 0.02
    w2 = jax.random.normal(k2, (dim, hidden_dim), dtype=jnp.float32) * 0.02
    w3 = jax.random.normal(k3, (hidden_dim, dim), dtype=jnp.float32) * 0.02

    # Prepare (transpose) weights once, outside the hot path.
    params = ffn_prepare(w1, w2, w3)
    apply_fn = jax.jit(ffn_apply)
    ref = _reference(x, w1, w2, w3)

    # --- float32, default tiling (tk == H: weights fully resident) ---
    out = jax.block_until_ready(apply_fn(x, *params))
    assert out.shape == (B, S, dim)
    assert jnp.allclose(out, ref, atol=1e-4, rtol=1e-4), "f32 mismatch vs reference"

    # --- float32, forced hidden-dim streaming (tk=128 -> 2 tiles) to exercise
    #     the two-phase accumulator path used at production dims ---
    out_s = jax.block_until_ready(
        jax.jit(functools.partial(ffn_apply, tk=128))(x, *params))
    assert jnp.allclose(out_s, ref, atol=1e-4, rtol=1e-4), "streaming mismatch vs reference"

    # --- bf16 fast path (bf16 x bf16 MXU operands, f32 accumulation) ---
    xb = x.astype(jnp.bfloat16)
    params_b = tuple(p.astype(jnp.bfloat16) for p in params)
    out_b = jax.block_until_ready(apply_fn(xb, *params_b))
    ref_b = _reference(xb.astype(jnp.float32),
                       w1.astype(jnp.bfloat16).astype(jnp.float32),
                       w2.astype(jnp.bfloat16).astype(jnp.float32),
                       w3.astype(jnp.bfloat16).astype(jnp.float32))
    assert out_b.shape == (B, S, dim)
    assert jnp.allclose(out_b.astype(jnp.float32), ref_b,
                        atol=2e-3, rtol=5e-2), "bf16 mismatch vs reference"

    print("KERNEL_OK")
</pallas_src>

<mosaic_0001>
module attributes {stable_mosaic.version = 11 : i64} {
  func.func @_ffn_kernel(%arg0: i32, %arg1: i32, %arg2: i32, %arg3: memref<16x256xf32, #tpu.memory_space<vmem>>, %arg4: memref<256x256xf32, #tpu.memory_space<vmem>>, %arg5: memref<256x256xf32, #tpu.memory_space<vmem>>, %arg6: memref<256x256xf32, #tpu.memory_space<vmem>>, %arg7: memref<16x256xf32, #tpu.memory_space<vmem>>, %arg8: memref<16x256xf32, #tpu.memory_space<vmem>>, %arg9: memref<16x256xf32, #tpu.memory_space<vmem>>, %arg10: memref<16x256xf32, #tpu.memory_space<vmem>>) attributes {dimension_semantics = [#tpu.dimension_semantics<parallel>, #tpu.dimension_semantics<arbitrary>, #tpu.dimension_semantics<arbitrary>], iteration_bounds = array<i64: 1, 2, 1>, scalar_prefetch = 0 : i64, scratch_operands = 3 : i64, tpu.core_type = #tpu.core_type<tc>, window_params = [{transform_indices = @transform_0, window_bounds = array<i64: 16, 256>}, {transform_indices = @transform_1, window_bounds = array<i64: 256, 256>}, {transform_indices = @transform_2, window_bounds = array<i64: 256, 256>}, {transform_indices = @transform_3, window_bounds = array<i64: 256, 256>}, {transform_indices = @transform_4, window_bounds = array<i64: 16, 256>}]} {
    %c256_i32 = arith.constant 256 : i32
    %0 = arith.muli %arg2, %c256_i32 : i32
    %1 = tpu.assume_multiple %0, 256 : i32
    %c0_i32 = arith.constant 0 : i32
    %2 = arith.cmpi eq, %arg1, %c0_i32 : i32
    %c0_i32_0 = arith.constant 0 : i32
    %3 = arith.cmpi eq, %arg2, %c0_i32_0 : i32
    %4 = arith.andi %2, %3 : i1
    %5 = arith.extui %4 : i1 to i32
    %c0_i32_1 = arith.constant 0 : i32
    %6 = arith.cmpi ne, %5, %c0_i32_1 : i32
    scf.if %6 {
      %cst = arith.constant 0.000000e+00 : f32
      %23 = vector.broadcast %cst : f32 to vector<16x256xf32>
      %c0 = arith.constant 0 : index
      %c0_11 = arith.constant 0 : index
      %24 = vector.load %arg9[%c0, %c0_11] : memref<16x256xf32, #tpu.memory_space<vmem>>, vector<16x256xf32>
      tpu.vector_store %arg9[%c0, %c0_11], %23 {strides = array<i32>} : memref<16x256xf32, #tpu.memory_space<vmem>>, vector<16x256xf32>,
    } else {
    }
    %c0_i32_2 = arith.constant 0 : i32
    %7 = arith.cmpi eq, %arg1, %c0_i32_2 : i32
    %8 = arith.extui %7 : i1 to i32
    %c0_i32_3 = arith.constant 0 : i32
    %9 = arith.cmpi ne, %8, %c0_i32_3 : i32
    scf.if %9 {
      %c0 = arith.constant 0 : index
      %c0_11 = arith.constant 0 : index
      %23 = vector.load %arg3[%c0, %c0_11] : memref<16x256xf32, #tpu.memory_space<vmem>>, vector<16x256xf32>
      %c0_12 = arith.constant 0 : index
      %c0_13 = arith.constant 0 : index
      %24 = vector.load %arg4[%c0_12, %c0_13] : memref<256x256xf32, #tpu.memory_space<vmem>>, vector<256x256xf32>
      %cst = arith.constant dense<0.000000e+00> : vector<16x256xf32>
      %25 = tpu.matmul %23, %24, %cst {dimension_numbers = #tpu.dot_dimension_numbers<[1], [0], [0], [1], [0, 0, 1, 1], [], []>} : vector<16x256xf32>, vector<256x256xf32>, vector<16x256xf32> -> vector<16x256xf32>
      %26 = arith.negf %25 : vector<16x256xf32>
      %27 = math.exp %26 : vector<16x256xf32>
      %cst_14 = arith.constant 1.000000e+00 : f32
      %28 = vector.broadcast %cst_14 : f32 to vector<16x256xf32>
      %29 = arith.addf %28, %27 : vector<16x256xf32>
      %30 = arith.divf %28, %29 : vector<16x256xf32>
      %31 = arith.mulf %25, %30 : vector<16x256xf32>
      %c0_15 = arith.constant 0 : index
      %32 = arith.index_cast %1 : i32 to index
      %33 = vector.load %arg8[%c0_15, %32] : memref<16x256xf32, #tpu.memory_space<vmem>>, vector<16x256xf32>
      tpu.vector_store %arg8[%c0_15, %32], %31 {strides = array<i32>} : memref<16x256xf32, #tpu.memory_space<vmem>>, vector<16x256xf32>,
      %c0_16 = arith.constant 0 : index
      %c0_17 = arith.constant 0 : index
      %34 = vector.load %arg9[%c0_16, %c0_17] : memref<16x256xf32, #tpu.memory_space<vmem>>, vector<16x256xf32>
      %c0_18 = arith.constant 0 : index
      %c0_19 = arith.constant 0 : index
      %35 = vector.load %arg5[%c0_18, %c0_19] : memref<256x256xf32, #tpu.memory_space<vmem>>, vector<256x256xf32>
      %cst_20 = arith.constant dense<0.000000e+00> : vector<16x256xf32>
      %36 = tpu.matmul %31, %35, %cst_20 {dimension_numbers = #tpu.dot_dimension_numbers<[1], [0], [0], [1], [0, 0, 1, 1], [], []>} : vector<16x256xf32>, vector<256x256xf32>, vector<16x256xf32> -> vector<16x256xf32>
      %37 = arith.addf %34, %36 : vector<16x256xf32>
      %c0_21 = arith.constant 0 : index
      %c0_22 = arith.constant 0 : index
      %38 = vector.load %arg9[%c0_21, %c0_22] : memref<16x256xf32, #tpu.memory_space<vmem>>, vector<16x256xf32>
      tpu.vector_store %arg9[%c0_21, %c0_22], %37 {strides = array<i32>} : memref<16x256xf32, #tpu.memory_space<vmem>>, vector<16x256xf32>,
    } else {
    }
    %c1_i32 = arith.constant 1 : i32
    %10 = arith.cmpi eq, %arg1, %c1_i32 : i32
    %c0_i32_4 = arith.constant 0 : i32
    %11 = arith.cmpi eq, %arg2, %c0_i32_4 : i32
    %12 = arith.andi %10, %11 : i1
    %13 = arith.extui %12 : i1 to i32
    %c0_i32_5 = arith.constant 0 : i32
    %14 = arith.cmpi ne, %13, %c0_i32_5 : i32
    scf.if %14 {
      %cst = arith.constant 0.000000e+00 : f32
      %23 = vector.broadcast %cst : f32 to vector<16x256xf32>
      %c0 = arith.constant 0 : index
      %c0_11 = arith.constant 0 : index
      %24 = vector.load %arg10[%c0, %c0_11] : memref<16x256xf32, #tpu.memory_space<vmem>>, vector<16x256xf32>
      tpu.vector_store %arg10[%c0, %c0_11], %23 {strides = array<i32>} : memref<16x256xf32, #tpu.memory_space<vmem>>, vector<16x256xf32>,
    } else {
    }
    %c1_i32_6 = arith.constant 1 : i32
    %15 = arith.cmpi eq, %arg1, %c1_i32_6 : i32
    %16 = arith.extui %15 : i1 to i32
    %c0_i32_7 = arith.constant 0 : i32
    %17 = arith.cmpi ne, %16, %c0_i32_7 : i32
    scf.if %17 {
      %c0 = arith.constant 0 : index
      %23 = arith.index_cast %1 : i32 to index
      %24 = vector.load %arg8[%c0, %23] : memref<16x256xf32, #tpu.memory_space<vmem>>, vector<16x256xf32>
      %c0_11 = arith.constant 0 : index
      %25 = arith.index_cast %1 : i32 to index
      %26 = vector.load %arg9[%c0_11, %25] : memref<16x256xf32, #tpu.memory_space<vmem>>, vector<16x256xf32>
      %27 = arith.mulf %24, %26 : vector<16x256xf32>
      %c0_12 = arith.constant 0 : index
      %c0_13 = arith.constant 0 : index
      %28 = vector.load %arg10[%c0_12, %c0_13] : memref<16x256xf32, #tpu.memory_space<vmem>>, vector<16x256xf32>
      %c0_14 = arith.constant 0 : index
      %c0_15 = arith.constant 0 : index
      %29 = vector.load %arg6[%c0_14, %c0_15] : memref<256x256xf32, #tpu.memory_space<vmem>>, vector<256x256xf32>
      %cst = arith.constant dense<0.000000e+00> : vector<16x256xf32>
      %30 = tpu.matmul %27, %29, %cst {dimension_numbers = #tpu.dot_dimension_numbers<[1], [0], [0], [1], [0, 0, 1, 1], [], []>} : vector<16x256xf32>, vector<256x256xf32>, vector<16x256xf32> -> vector<16x256xf32>
      %31 = arith.addf %28, %30 : vector<16x256xf32>
      %c0_16 = arith.constant 0 : index
      %c0_17 = arith.constant 0 : index
      %32 = vector.load %arg10[%c0_16, %c0_17] : memref<16x256xf32, #tpu.memory_space<vmem>>, vector<16x256xf32>
      tpu.vector_store %arg10[%c0_16, %c0_17], %31 {strides = array<i32>} : memref<16x256xf32, #tpu.memory_space<vmem>>, vector<16x256xf32>,
    } else {
    }
    %c1_i32_8 = arith.constant 1 : i32
    %18 = arith.cmpi eq, %arg1, %c1_i32_8 : i32
    %c0_i32_9 = arith.constant 0 : i32
    %19 = arith.cmpi eq, %arg2, %c0_i32_9 : i32
    %20 = arith.andi %18, %19 : i1
    %21 = arith.extui %20 : i1 to i32
    %c0_i32_10 = arith.constant 0 : i32
    %22 = arith.cmpi ne, %21, %c0_i32_10 : i32
    scf.if %22 {
      %c0 = arith.constant 0 : index
      %c0_11 = arith.constant 0 : index
      %23 = vector.load %arg10[%c0, %c0_11] : memref<16x256xf32, #tpu.memory_space<vmem>>, vector<16x256xf32>
      %c0_12 = arith.constant 0 : index
      %c0_13 = arith.constant 0 : index
      %24 = vector.load %arg7[%c0_12, %c0_13] : memref<16x256xf32, #tpu.memory_space<vmem>>, vector<16x256xf32>
      tpu.vector_store %arg7[%c0_12, %c0_13], %23 {strides = array<i32>} : memref<16x256xf32, #tpu.memory_space<vmem>>, vector<16x256xf32>,
    } else {
    }
    return
  }
  func.func @transform_0(%arg0: i32, %arg1: i32, %arg2: i32) -> (i32, i32) {
    %c0_i32 = arith.constant 0 : i32
    %c0_i32_0 = arith.constant 0 : i32
    return %arg0, %c0_i32 : i32, i32
  }
  func.func @transform_1(%arg0: i32, %arg1: i32, %arg2: i32) -> (i32, i32) {
    %c0_i32 = arith.constant 0 : i32
    %0 = arith.cmpi eq, %arg1, %c0_i32 : i32
    %c0_i32_0 = arith.constant 0 : i32
    %1 = arith.select %0, %arg2, %c0_i32_0 : i32
    %c0_i32_1 = arith.constant 0 : i32
    %c0_i32_2 = arith.constant 0 : i32
    return %c0_i32_1, %1 : i32, i32
  }
  func.func @transform_2(%arg0: i32, %arg1: i32, %arg2: i32) -> (i32, i32) {
    %c0_i32 = arith.constant 0 : i32
    %0 = arith.cmpi eq, %arg1, %c0_i32 : i32
    %c0_i32_0 = arith.constant 0 : i32
    %1 = arith.select %0, %arg2, %c0_i32_0 : i32
    %c0_i32_1 = arith.constant 0 : i32
    %c0_i32_2 = arith.constant 0 : i32
    return %1, %c0_i32_1 : i32, i32
  }
  func.func @transform_3(%arg0: i32, %arg1: i32, %arg2: i32) -> (i32, i32) {
    %c0_i32 = arith.constant 0 : i32
    %0 = arith.cmpi eq, %arg1, %c0_i32 : i32
    %c0_i32_0 = arith.constant 0 : i32
    %1 = arith.select %0, %c0_i32_0, %arg2 : i32
    %c0_i32_1 = arith.constant 0 : i32
    %c0_i32_2 = arith.constant 0 : i32
    return %1, %c0_i32_1 : i32, i32
  }
  func.func @transform_4(%arg0: i32, %arg1: i32, %arg2: i32) -> (i32, i32) {
    %c0_i32 = arith.constant 0 : i32
    %c0_i32_0 = arith.constant 0 : i32
    return %arg0, %c0_i32 : i32, i32
  }
}

</mosaic_0001>

<bundles_post_ra>
// kernel: ffn_apply.1
= control target key start
LH: loop header
LB: loop body
LE: loop exit
PB: predicated region body
PF: predicated region fallthrough
CT: control target
= control target key end

     0   :  { %9 = vsyncpa [#allocation6], 0  ;;  %s1798_s0 = inlined_call_operand.hbm [shape: f32[16,256], index: 0, kind: input, shape index: {}]   ;;  %s1799_s1 = inlined_call_operand.hbm [shape: f32[256,256], index: 1, kind: input, shape index: {}]   ;;  %s1800_s2 = inlined_call_operand.hbm [shape: f32[256,256], index: 2, kind: input, shape index: {}]   ;;  %s1801_s3 = inlined_call_operand.hbm [shape: f32[256,256], index: 3, kind: input, shape index: {}]   ;;  %s1802_s4 = inlined_call_operand.hbm [shape: f32[16,256], index: 4, kind: output, shape index: {}]  }
   0x1   :  { %10 = vsyncpa [#allocation9], 0 }
   0x2   :  { %12 = vsyncpa [#allocation9 + $0x1], 0 }
   0x3   :  { %13 = vsyncpa [#allocation12], 0 }
   0x4   :  { %15 = vsyncpa [#allocation12 + $0x1], 0 }
   0x5   :  { %16 = vsyncpa [#allocation7], 0  ;;  %s1601_s15 = smov 0   ;;  %s1603_s16 = smov 0  }
   0x6   :  { %s1605_s17 = smov 0  }
   0x7 LB: > { %p1326_p0 = scmp.lt.s32.totalorder %s1563_s17, 2  ;;  %p1327_p1 = scmp.eq.s32.totalorder %s1563_s17, 0  ;;  %s1563_s17 = sphi %s1605_s17, %s22_s17   ;;  %s1559_s16 = sphi %s1603_s16, %s1824_s16   ;;  %s1555_s15 = sphi %s1601_s15, %s1823_s15  }
   0x8   : > { %s218_s18 = sand.u32 1, %s1563_s17   ;;  %s1565_s19 = smov [#allocation8]  }
   0x9   : > { %s231_s20 = sshll.u32 %s1565_s19, 4  ;;  %p1619_p2 = pnand %p1327_p1, %p1326_p0  ;;  %s232_s20 = int_to_ptr.vmem [resolvable:$true] %s231_s20 }
   0xa   : > { %s1623_s22 = scalar_lea.sflag [#allocation9], %s218_s18  ;;  %s1387_s25 = scalar_lea.hbm %s1799_s1, 8192 }
   0xb   : > { %s1809_s21 = scalar_select %p1619_p2, 1, 0 }
   0xc   : > { %p1388_p3 = scmp.ne.s32.totalorder %s1799_s1, %s1387_s25  ;;  %p1633_p4 = pneg %p1619_p2 }
   0xd   : > { %p1394_p7 = scmp.lt.u32.totalorder %s1387_s25, %s1799_s1 }
   0xe   : > { %s1810_s28 = scalar_select %p1633_p4, 1, 0 }
   0xf   : > { %p1390_p5 = pnand %p1633_p4, %p1388_p3 }
  0x11   : > { %p1391_p6 = pneg %p1390_p5 }
  0x13   : > { %p1396_p8 = pnand %p1394_p7, %p1391_p6 }
  0x15   : > { %1399 = shalt.err (!%p1396_p8)
}
  0x16   : > { %s1400_s5 = scalar_lea.vmem %s232_s20, 8192  ;;  %s1407_s6 = scalar_lea.vmem %s232_s20, 16384 }
  0x17   : > { %p1401_p9 = scmp.ne.s32.totalorder %s232_s20, %s1400_s5  ;;  %p1408_p12 = scmp.lt.s32.totalorder %s232_s20, %s232_s20 }
  0x18   : > { %p1409_p13 = scmp.lt.s32.totalorder %s1407_s6, %s1400_s5 }
  0x19   : > { %p1403_p10 = pnand %p1401_p9, %p1633_p4 }
  0x1a   : > { %p1410_p0 = por %p1409_p13, %p1408_p12 }
  0x1b   : > { %p1404_p11 = pneg %p1403_p10 }
  0x1d   : > { %p1411_p1 = pnand %p1410_p0, %p1404_p11 }
  0x1f   : > { %1414 = shalt.err (!%p1411_p1)
}
  0x20   : > { %s1566_s7 = smov 256   ;;  %s1567_s8 = smov 16  }
  0x21   : > { %1318 = dma.hbm_to_vmem [thread:$0]  (!%p1619_p2), %s1799_s1, 8192, %s232_s20, %s1623_s22, %s1566_s7, %s1566_s7, %s1567_s8  }
  0x22   : > { %s1654_s11 = sadd.s32 4294967295, %s1563_s17   ;;  %s37_s12 = sadd.s32 1, %s1559_s16 }
  0x23   : > { %p1042_p3 = scmp.ge.s32.totalorder %s1563_s17, 1  ;;  %p39_p5 = scmp.ge.s32.totalorder %s37_s12, 2 }
  0x24   : > { %p188_p6 = scmp.lt.s32.totalorder %s1563_s17, 3  ;;  %p1803_p7 = scmp.eq.s32.totalorder %s1654_s11, 0 }
  0x25   : > { %s1826_s12 = smov (%p39_p5, %s37_s12), 0  ;;  %s1568_s14 = smov [#allocation5]  }
  0x26   : > { %p1662_p8 = pnand %p1042_p3, %p188_p6  ;;  %s204_s18 = sshll.u32 %s1568_s14, 4  ;;  %s1668_s18 = int_to_ptr.vmem [resolvable:$true] %s204_s18 }
  0x27   : > { %s1569_s19 = smov [#allocation10]   ;;  %s1415_s26 = scalar_lea.hbm %s1800_s2, 8192 }
  0x28   : > { %s1811_s13 = scalar_select %p1662_p8, 1, 0 }
  0x29   : > { %p1311_p9 = pneg %p1662_p8  ;;  %s255_s20 = sshll.u32 %s1569_s19, 4  ;;  %s256_s20 = int_to_ptr.vmem [resolvable:$true] %s255_s20 }
  0x2a   : > { %p1416_p11 = scmp.ne.s32.totalorder %s1800_s2, %s1415_s26  ;;  %p1422_p0 = scmp.lt.u32.totalorder %s1415_s26, %s1800_s2 }
  0x2b   : > { %p1672_p10 = pnand %p1803_p7, %p1311_p9 }
  0x2c   : > { %p1418_p12 = pnand %p1416_p11, %p1633_p4 }
  0x2d   : > { %s1812_s23 = scalar_select %p1672_p10, 1, 0 }
  0x2e   : > { %p1419_p13 = pneg %p1418_p12 }
  0x30   : > { %p1424_p1 = pnand %p1422_p0, %p1419_p13 }
  0x32   : > { %1427 = shalt.err (!%p1424_p1)
}
  0x33   : > { %s1428_s6 = scalar_lea.vmem %s256_s20, 8192  ;;  %s1435_s9 = scalar_lea.vmem %s256_s20, 16384 }
  0x34   : > { %p1429_p3 = scmp.ne.s32.totalorder %s256_s20, %s1428_s6  ;;  %p1436_p9 = scmp.lt.s32.totalorder %s256_s20, %s256_s20 }
  0x35   : > { %p1437_p7 = scmp.lt.s32.totalorder %s1435_s9, %s1428_s6 }
  0x36   : > { %p1431_p5 = pnand %p1429_p3, %p1633_p4 }
  0x37   : > { %p1438_p8 = por %p1437_p7, %p1436_p9 }
  0x38   : > { %p1432_p6 = pneg %p1431_p5 }
  0x3a   : > { %p1439_p10 = pnand %p1438_p8, %p1432_p6 }
  0x3c   : > { %1442 = shalt.err (!%p1439_p10)
}
  0x3d   : > { %1321 = dma.hbm_to_vmem [thread:$0]  (!%p1619_p2), %s1800_s2, 8192, %s256_s20, %s1623_s22, %s1566_s7, %s1566_s7, %s1567_s8  }
  0x3e   : > { %s1570_s19 = smov [#allocation11]   ;;  %s1443_s27 = scalar_lea.hbm %s1798_s0, 512 }
  0x3f   : > { %s279_s24 = sshll.u32 %s1570_s19, 4  ;;  %p1444_p7 = scmp.ne.s32.totalorder %s1798_s0, %s1443_s27  ;;  %s280_s24 = int_to_ptr.vmem [resolvable:$true] %s279_s24 }
  0x40   : > { %p1813_p8 = scmp.ne.s32.totalorder %s1812_s23, 0  ;;  %p1450_p13 = scmp.lt.u32.totalorder %s1443_s27, %s1798_s0 }
  0x42   : > { %p1445_p10 = pneg %p1813_p8 }
  0x44   : > { %p1446_p11 = pnand %p1445_p10, %p1444_p7 }
  0x46   : > { %p1447_p12 = pneg %p1446_p11 }
  0x48   : > { %p1452_p0 = pnand %p1450_p13, %p1447_p12 }
  0x4a   : > { %1455 = shalt.err (!%p1452_p0)
}
  0x4b   : > { %s1456_s22 = scalar_lea.vmem %s1668_s18, 512  ;;  %p1464_p6 = scmp.lt.s32.totalorder %s1668_s18, %s1668_s18 }
  0x4c   : > { %p1457_p1 = scmp.ne.s32.totalorder %s1668_s18, %s1456_s22  ;;  %p1465_p9 = scmp.lt.s32.totalorder %s1456_s22, %s1456_s22 }
  0x4e   : > { %p1459_p3 = pnand %p1457_p1, %p1445_p10  ;;  %p1466_p2 = por %p1465_p9, %p1464_p6 }
  0x50   : > { %p1460_p5 = pneg %p1459_p3 }
  0x52   : > { %p1467_p4 = pnand %p1466_p2, %p1460_p5 }
  0x54   : > { %1470 = shalt.err (!%p1467_p4)
}
  0x55   : > { %1314 = dma.hbm_to_vmem [thread:$0]  (!%p1813_p8), %s1798_s0, 512, %s1668_s18, [#allocation6], %s1566_s7, %s1566_s7, %s1567_s8  }
  0x56   : > { %s1471_s19 = scalar_lea.hbm %s1801_s3, 8192  ;;  %p1814_p4 = scmp.ne.s32.totalorder %s1810_s28, 0 }
  0x57   : > { %p1472_p2 = scmp.ne.s32.totalorder %s1801_s3, %s1471_s19  ;;  %p1478_p11 = scmp.lt.u32.totalorder %s1471_s19, %s1801_s3 }
  0x59   : > { %p1474_p7 = pnand %p1472_p2, %p1814_p4 }
  0x5b   : > { %p1475_p10 = pneg %p1474_p7 }
  0x5d   : > { %p1480_p12 = pnand %p1478_p11, %p1475_p10 }
  0x5f   : > { %1483 = shalt.err (!%p1480_p12)
}
  0x60   : > { %s1484_s29 = scalar_lea.vmem %s280_s24, 8192  ;;  %s1491_s18 = scalar_lea.vmem %s280_s24, 16384 }
  0x61   : > { %p1485_p8 = scmp.ne.s32.totalorder %s280_s24, %s1484_s29  ;;  %p1492_p1 = scmp.lt.s32.totalorder %s280_s24, %s280_s24 }
  0x62   : > { %p1493_p3 = scmp.lt.s32.totalorder %s1491_s18, %s1484_s29 }
  0x63   : > { %p1487_p13 = pnand %p1485_p8, %p1814_p4 }
  0x64   : > { %p1494_p5 = por %p1493_p3, %p1492_p1 }
  0x65   : > { %p1488_p0 = pneg %p1487_p13 }
  0x67   : > { %p1495_p6 = pnand %p1494_p5, %p1488_p0 }
  0x69   : > { %1498 = shalt.err (!%p1495_p6)
}
  0x6a   : > { %p1815_p9 = scmp.ne.s32.totalorder %s1809_s21, 0  ;;  %p1816_p2 = scmp.ne.s32.totalorder %s1811_s13, 0 }
  0x6b   : > { %p1817_p4 = scmp.eq.s32.totalorder (!%p1816_p2), %s1654_s11, 0 }
  0x6c   : > { %1324 = dma.hbm_to_vmem [thread:$0]  (!%p1815_p9), %s1801_s3, 8192, %s280_s24, [#allocation12], %s1566_s7, %s1566_s7, %s1567_s8  }
  0x6d   : > { %291 = sbr.rel (%p1816_p2) target bundleno = 989 (0x3dd), region = 36 }
  0x74   : > { %1538 = dma.done.wait (%p1817_p4), [#allocation6], 512   ;;  %p1818_p7 = pmov %p1817_p4 }
  0x75   : > { %s297_s28 = sand.u32 1, %s1654_s11   ;;  %p1819_p10 = pmov %p1817_p4 }
  0x76   : > { %1540 = vsyncadd (%p1818_p7), [#allocation6], 4294966784  ;;  %s298_s21 = scalar_lea.sflag [#allocation9], %s297_s28 }
  0x77   : > { %1542 = dma.done.wait (%p1819_p10), %s298_s21, 16384   ;;  %p1820_p11 = pmov %p1817_p4 }
  0x78   : > { %p1821_p12 = pmov %p1817_p4 }
  0x79   : > { %1544 = vsyncadd (%p1820_p11), %s298_s21, 4294950912 }
  0x7a   : > { %1546 = dma.done.wait (%p1821_p12), [#allocation12], 8192   ;;  %p1822_p8 = pmov %p1817_p4 }
  0x7b   : > { %p361_p13 = scmp.eq.s32.totalorder %s1555_s15, 0 }
  0x7c   : > { %1548 = vsyncadd (%p1822_p8), [#allocation12], 4294959104  ;;  %v1571_v0 = vmov (%p361_p13), 0.0  }
  0x7d   : > { %366 = sbr.rel (!%p361_p13) target bundleno = 132 (0x84), region = 56  ;;  %367 = vst [vmem:[#allocation3] sm:$0xff] (%p361_p13), %v1571_v0  ;;  %368 = vst [vmem:[#allocation3 + $0x8] sm:$0xff] (%p361_p13), %v1571_v0 }
  0x7e   : > { %369 = vst [vmem:[#allocation3 + $0x10] sm:$0xff] (%p361_p13), %v1571_v0  ;;  %370 = vst [vmem:[#allocation3 + $0x18] sm:$0xff] (%p361_p13), %v1571_v0 }
  0x84 PF: > { %p1054_p0 = scmp.ne.s32.totalorder %s1555_s15, 0 }
  0x85   : > { %v379_v1 = vld [vmem:[#allocation8 + $0x8] sm:$0xff] (!%p1054_p0)  ;;  %v381_v2 = vld [vmem:[#allocation8 + $0x18] sm:$0xff] (!%p1054_p0)  ;;  %v378_v3 = vld [vmem:[#allocation8] sm:$0xff] (!%p1054_p0) }
  0x86   : > { %373 = sbr.rel (%p1054_p0) target bundleno = 662 (0x296), region = 60  ;;  %v1067_v4 = vpack.c.bf16 (!%p1054_p0), %v381_v2, %v379_v1  ;;  %v380_v5 = vld [vmem:[#allocation8 + $0x10] sm:$0xff] (!%p1054_p0)  ;;  %v383_v6 = vld [vmem:[#allocation8 + $0x28] sm:$0xff] (!%p1054_p0)  ;;  %v385_v7 = vld [vmem:[#allocation8 + $0x38] sm:$0xff] (!%p1054_p0) }
  0x87   : > { %v1069_v8 = vpack.c.bf16 (!%p1054_p0), %v380_v5, %v378_v3  ;;  %v1071_v9 = vpack.c.bf16 (!%p1054_p0), %v385_v7, %v383_v6  ;;  %v382_v10 = vld [vmem:[#allocation8 + $0x20] sm:$0xff] (!%p1054_p0)  ;;  %v384_v11 = vld [vmem:[#allocation8 + $0x30] sm:$0xff] (!%p1054_p0)  ;;  %v387_v12 = vld [vmem:[#allocation8 + $0x48] sm:$0xff] (!%p1054_p0) }
  0x88   : > { %1068 = vmatprep.subr.bf16.mxu0 (!%p1054_p0), %v1067_v4  ;;  %v389_v13 = vld [vmem:[#allocation8 + $0x58] sm:$0xff] (!%p1054_p0)  ;;  %v1073_v14 = vpack.c.bf16 (!%p1054_p0), %v384_v11, %v382_v10  ;;  %v386_v16 = vld [vmem:[#allocation8 + $0x40] sm:$0xff] (!%p1054_p0)  ;;  %v388_v17 = vld [vmem:[#allocation8 + $0x50] sm:$0xff] (!%p1054_p0) }
  0x89   : > { %1070 = vmatpush1.bf16.msra.mxu0 (!%p1054_p0), %v1069_v8  ;;  %v1075_v15 = vpack.c.bf16 (!%p1054_p0), %v389_v13, %v387_v12  ;;  %v391_v18 = vld [vmem:[#allocation8 + $0x68] sm:$0xff] (!%p1054_p0)  ;;  %v393_v19 = vld [vmem:[#allocation8 + $0x78] sm:$0xff] (!%p1054_p0)  ;;  %v1077_v20 = vpack.c.bf16 (!%p1054_p0), %v388_v17, %v386_v16  ;;  %v390_v22 = vld [vmem:[#allocation8 + $0x60] sm:$0xff] (!%p1054_p0) }
  0x8a   : > { %1072 = vmatprep.subr.bf16.mxu0 (!%p1054_p0), %v1071_v9  ;;  %v1079_v21 = vpack.c.bf16 (!%p1054_p0), %v393_v19, %v391_v18  ;;  %v392_v23 = vld [vmem:[#allocation8 + $0x70] sm:$0xff] (!%p1054_p0)  ;;  %v395_v24 = vld [vmem:[#allocation8 + $0x88] sm:$0xff] (!%p1054_p0)  ;;  %v397_v25 = vld [vmem:[#allocation8 + $0x98] sm:$0xff] (!%p1054_p0) }
  0x8b   : > { %v1081_v26 = vpack.c.bf16 (!%p1054_p0), %v392_v23, %v390_v22  ;;  %v1083_v27 = vpack.c.bf16 (!%p1054_p0), %v397_v25, %v395_v24  ;;  %v394_v28 = vld [vmem:[#allocation8 + $0x80] sm:$0xff] (!%p1054_p0)  ;;  %v396_v29 = vld [vmem:[#allocation8 + $0x90] sm:$0xff] (!%p1054_p0)  ;;  %v399_v30 = vld [vmem:[#allocation8 + $0xa8] sm:$0xff] (!%p1054_p0) }
  0x8c   : > { %v401_v31 = vld [vmem:[#allocation8 + $0xb8] sm:$0xff] (!%p1054_p0)  ;;  %v1085_v32 = vpack.c.bf16 (!%p1054_p0), %v396_v29, %v394_v28  ;;  %v398_v34 = vld [vmem:[#allocation8 + $0xa0] sm:$0xff] (!%p1054_p0)  ;;  %v400_v35 = vld [vmem:[#allocation8 + $0xb0] sm:$0xff] (!%p1054_p0) }
  0x8d   : > { %1074 = vmatpush1.bf16.msra.mxu0 %v1073_v14  ;;  %v1087_v33 = vpack.c.bf16 %v401_v31, %v399_v30  ;;  %v403_v36 = vld [vmem:[#allocation8 + $0xc8] sm:$0xff]  ;;  %v405_v37 = vld [vmem:[#allocation8 + $0xd8] sm:$0xff]  ;;  %v1089_v38 = vpack.c.bf16 %v400_v35, %v398_v34  ;;  %v402_v40 = vld [vmem:[#allocation8 + $0xc0] sm:$0xff] }
  0x8e   : > { %1076 = vmatprep.subr.bf16.mxu0 %v1075_v15  ;;  %v1091_v39 = vpack.c.bf16 %v405_v37, %v403_v36  ;;  %v404_v41 = vld [vmem:[#allocation8 + $0xd0] sm:$0xff]  ;;  %v375_v42 = vld [vmem:[#allocation5 + $0x8] sm:$0xff]  ;;  %v409_v44 = vld [vmem:[#allocation8 + $0xf8] sm:$0xff] }
  0x8f   : > { %v407_v43 = vld [vmem:[#allocation8 + $0xe8] sm:$0xff]  ;;  %506 = vmatprep.mubr.f32.mxu0 %v375_v42  ;;  %v406_v46 = vld [vmem:[#allocation8 + $0xe0] sm:$0xff]  ;;  %v408_v47 = vld [vmem:[#allocation8 + $0xf0] sm:$0xff]  ;;  %v1093_v51 = vpack.c.bf16 %v404_v41, %v402_v40 }
  0x90   : > { %v560_v45 = vld [vmem:[#allocation10 + $0x8] sm:$0xff]  ;;  %v562_v48 = vld [vmem:[#allocation10 + $0x18] sm:$0xff]  ;;  %v559_v49 = vld [vmem:[#allocation10] sm:$0xff]  ;;  %v1095_v57 = vpack.c.bf16 %v409_v44, %v407_v43  ;;  %v1097_v1 = vpack.c.bf16 %v408_v47, %v406_v46 }
  0x91   : > { %1078 = vmatpush1.bf16.msra.mxu0 %v1077_v20  ;;  %v561_v50 = vld [vmem:[#allocation10 + $0x10] sm:$0xff]  ;;  %v1131_v52 = vpack.c.bf16 %v562_v48, %v560_v45  ;;  %v564_v54 = vld [vmem:[#allocation10 + $0x28] sm:$0xff]  ;;  %v566_v55 = vld [vmem:[#allocation10 + $0x38] sm:$0xff] }
  0x92   : > { %1080 = vmatprep.subr.bf16.mxu0 %v1079_v21  ;;  %v1133_v53 = vpack.c.bf16 %v561_v50, %v559_v49  ;;  %v563_v56 = vld [vmem:[#allocation10 + $0x20] sm:$0xff]  ;;  %v1135_v58 = vpack.c.bf16 %v566_v55, %v564_v54  ;;  %v565_v59 = vld [vmem:[#allocation10 + $0x30] sm:$0xff]  ;;  %v568_v60 = vld [vmem:[#allocation10 + $0x48] sm:$0xff] }
  0x93   : > { %v570_v61 = vld [vmem:[#allocation10 + $0x58] sm:$0xff]  ;;  %v411_v62 = vld [vmem:[#allocation8 + $0x108] sm:$0xff]  ;;  %1132 = vmatprep.subr.bf16.mxu1 %v1131_v52  ;;  %v1137_v0 = vpack.c.bf16 %v565_v59, %v563_v56  ;;  %v410_v2 = vld [vmem:[#allocation8 + $0x100] sm:$0xff] }
  0x94   : > { %v413_v63 = vld [vmem:[#allocation8 + $0x118] sm:$0xff]  ;;  %1134 = vmatpush1.bf16.msra.mxu1 %v1133_v53  ;;  %v1139_v3 = vpack.c.bf16 %v570_v61, %v568_v60  ;;  %v567_v4 = vld [vmem:[#allocation10 + $0x40] sm:$0xff]  ;;  %v569_v5 = vld [vmem:[#allocation10 + $0x50] sm:$0xff] }
  0x95   : > { %1082 = vmatpush1.bf16.msra.mxu0 %v1081_v26  ;;  %1136 = vmatprep.subr.bf16.mxu1 %v1135_v58  ;;  %v1099_v6 = vpack.c.bf16 %v413_v63, %v411_v62  ;;  %v412_v7 = vld [vmem:[#allocation8 + $0x110] sm:$0xff]  ;;  %v572_v8 = vld [vmem:[#allocation10 + $0x68] sm:$0xff]  ;;  %v574_v9 = vld [vmem:[#allocation10 + $0x78] sm:$0xff]  ;;  %v1141_v12 = vpack.c.bf16 %v569_v5, %v567_v4 }
  0x96   : > { %1084 = vmatprep.subr.bf16.mxu0 %v1083_v27  ;;  %v415_v10 = vld [vmem:[#allocation8 + $0x128] sm:$0xff]  ;;  %v417_v11 = vld [vmem:[#allocation8 + $0x138] sm:$0xff]  ;;  %v1101_v13 = vpack.c.bf16 %v412_v7, %v410_v2  ;;  %v414_v14 = vld [vmem:[#allocation8 + $0x120] sm:$0xff]  ;;  %v1143_v15 = vpack.c.bf16 %v574_v9, %v572_v8 }
  0x97   : > { %v571_v16 = vld [vmem:[#allocation10 + $0x60] sm:$0xff]  ;;  %v573_v17 = vld [vmem:[#allocation10 + $0x70] sm:$0xff]  ;;  %v1103_v18 = vpack.c.bf16 %v417_v11, %v415_v10  ;;  %v576_v20 = vld [vmem:[#allocation10 + $0x88] sm:$0xff] }
  0x98   : > { %1138 = vmatpush1.bf16.msra.mxu1 %v1137_v0  ;;  %v416_v19 = vld [vmem:[#allocation8 + $0x130] sm:$0xff]  ;;  %v578_v21 = vld [vmem:[#allocation10 + $0x98] sm:$0xff]  ;;  %v419_v22 = vld [vmem:[#allocation8 + $0x148] sm:$0xff]  ;;  %v1145_v24 = vpack.c.bf16 %v573_v17, %v571_v16 }
  0x99   : > { %1086 = vmatpush1.bf16.msra.mxu0 %v1085_v32  ;;  %1140 = vmatprep.subr.bf16.mxu1 %v1139_v3  ;;  %v421_v23 = vld [vmem:[#allocation8 + $0x158] sm:$0xff]  ;;  %v1105_v25 = vpack.c.bf16 %v416_v19, %v414_v14  ;;  %v418_v26 = vld [vmem:[#allocation8 + $0x140] sm:$0xff]  ;;  %v1147_v27 = vpack.c.bf16 %v578_v21, %v576_v20  ;;  %v577_v29 = vld [vmem:[#allocation10 + $0x90] sm:$0xff] }
  0x9a   : > { %1088 = vmatprep.subr.bf16.mxu0 %v1087_v33  ;;  %v575_v28 = vld [vmem:[#allocation10 + $0x80] sm:$0xff]  ;;  %v1107_v30 = vpack.c.bf16 %v421_v23, %v419_v22  ;;  %v420_v31 = vld [vmem:[#allocation8 + $0x150] sm:$0xff]  ;;  %v580_v32 = vld [vmem:[#allocation10 + $0xa8] sm:$0xff] }
  0x9b   : > { %v582_v33 = vld [vmem:[#allocation10 + $0xb8] sm:$0xff]  ;;  %v423_v34 = vld [vmem:[#allocation8 + $0x168] sm:$0xff]  ;;  %v1149_v36 = vpack.c.bf16 %v577_v29, %v575_v28  ;;  %v1109_v37 = vpack.c.bf16 %v420_v31, %v418_v26  ;;  %v579_v40 = vld [vmem:[#allocation10 + $0xa0] sm:$0xff] }
  0x9c   : > { %1142 = vmatpush1.bf16.msra.mxu1 %v1141_v12  ;;  %v425_v35 = vld [vmem:[#allocation8 + $0x178] sm:$0xff]  ;;  %v581_v41 = vld [vmem:[#allocation10 + $0xb0] sm:$0xff]  ;;  %v584_v44 = vld [vmem:[#allocation10 + $0xc8] sm:$0xff] }
  0x9d   : > { %1090 = vmatpush1.bf16.msra.mxu0 %v1089_v38  ;;  %1144 = vmatprep.subr.bf16.mxu1 %v1143_v15  ;;  %v422_v38 = vld [vmem:[#allocation8 + $0x160] sm:$0xff]  ;;  %v1111_v42 = vpack.c.bf16 %v425_v35, %v423_v34  ;;  %v424_v43 = vld [vmem:[#allocation8 + $0x170] sm:$0xff]  ;;  %v586_v45 = vld [vmem:[#allocation10 + $0xd8] sm:$0xff]  ;;  %v1153_v48 = vpack.c.bf16 %v581_v41, %v579_v40 }
  0x9e   : > { %1092 = vmatprep.subr.bf16.mxu0 %v1091_v39  ;;  %v1151_v39 = vpack.c.bf16 %v582_v33, %v580_v32  ;;  %v427_v46 = vld [vmem:[#allocation8 + $0x188] sm:$0xff]  ;;  %v429_v47 = vld [vmem:[#allocation8 + $0x198] sm:$0xff]  ;;  %v1113_v49 = vpack.c.bf16 %v424_v43, %v422_v38  ;;  %v426_v50 = vld [vmem:[#allocation8 + $0x180] sm:$0xff] }
  0x9f   : > { %v583_v52 = vld [vmem:[#allocation10 + $0xc0] sm:$0xff]  ;;  %v585_v53 = vld [vmem:[#allocation10 + $0xd0] sm:$0xff]  ;;  %v1115_v54 = vpack.c.bf16 %v429_v47, %v427_v46  ;;  %v588_v56 = vld [vmem:[#allocation10 + $0xe8] sm:$0xff] }
  0xa0   : > { %1146 = vmatpush1.bf16.msra.mxu1 %v1145_v24  ;;  %v428_v55 = vld [vmem:[#allocation8 + $0x190] sm:$0xff]  ;;  %v431_v58 = vld [vmem:[#allocation8 + $0x1a8] sm:$0xff]  ;;  %v433_v59 = vld [vmem:[#allocation8 + $0x1b8] sm:$0xff]  ;;  %v1157_v60 = vpack.c.bf16 %v585_v53, %v583_v52 }
  0xa1   : > { %1094 = vmatpush1.bf16.msra.mxu0 %v1093_v51  ;;  %1148 = vmatprep.subr.bf16.mxu1 %v1147_v27  ;;  %v1155_v51 = vpack.c.bf16 %v586_v45, %v584_v44  ;;  %v1117_v61 = vpack.c.bf16 %v428_v55, %v426_v50  ;;  %v430_v62 = vld [vmem:[#allocation8 + $0x1a0] sm:$0xff]  ;;  %v1119_v2 = vpack.c.bf16 %v433_v59, %v431_v58  ;;  %v432_v3 = vld [vmem:[#allocation8 + $0x1b0] sm:$0xff]  ;;  %v592_v4 = vld [vmem:[#allocation10 + $0x108] sm:$0xff] }
  0xa2   : > { %1096 = vmatprep.subr.bf16.mxu0 %v1095_v57  ;;  %v590_v57 = vld [vmem:[#allocation10 + $0xf8] sm:$0xff]  ;;  %v587_v0 = vld [vmem:[#allocation10 + $0xe0] sm:$0xff]  ;;  %v1121_v9 = vpack.c.bf16 %v432_v3, %v430_v62  ;;  %v439_v14 = vld [vmem:[#allocation8 + $0x1e8] sm:$0xff] }
  0xa3   : > { %v1159_v63 = vpack.c.bf16 %v590_v57, %v588_v56  ;;  %v594_v5 = vld [vmem:[#allocation10 + $0x118] sm:$0xff]  ;;  %v434_v12 = vld [vmem:[#allocation8 + $0x1c0] sm:$0xff]  ;;  %v440_v19 = vld [vmem:[#allocation8 + $0x1f0] sm:$0xff] }
  0xa4   : > { %1150 = vmatpush1.bf16.msra.mxu1 %v1149_v36  ;;  %v437_v7 = vld [vmem:[#allocation8 + $0x1d8] sm:$0xff]  ;;  %v1163_v10 = vpack.c.bf16 %v594_v5, %v592_v4  ;;  %v374_v21 = vld [vmem:[#allocation5] sm:$0xff]  ;;  %v376_v23 = vld [vmem:[#allocation5 + $0x10] sm:$0xff] }
  0xa5   : > { %1098 = vmatpush1.bf16.msra.mxu0 %v1097_v1  ;;  %1152 = vmatprep.subr.bf16.mxu1 %v1151_v39  ;;  %v589_v1 = vld [vmem:[#allocation10 + $0xf0] sm:$0xff]  ;;  %v441_v15 = vld [vmem:[#allocation8 + $0x1f8] sm:$0xff]  ;;  %v591_v24 = vld [vmem:[#allocation10 + $0x100] sm:$0xff] }
  0xa6   : > { %1100 = vmatprep.subr.bf16.mxu0 %v1099_v6  ;;  %v435_v6 = vld [vmem:[#allocation8 + $0x1c8] sm:$0xff]  ;;  %v1161_v8 = vpack.c.bf16 %v589_v1, %v587_v0  ;;  %v1127_v17 = vpack.c.bf16 %v441_v15, %v439_v14  ;;  %v377_v22 = vld [vmem:[#allocation5 + $0x18] sm:$0xff]  ;;  %v597_v31 = vld [vmem:[#allocation10 + $0x130] sm:$0xff] }
  0xa7   : > { %v1123_v11 = vpack.c.bf16 %v437_v7, %v435_v6  ;;  %v596_v27 = vld [vmem:[#allocation10 + $0x128] sm:$0xff]  ;;  %v598_v28 = vld [vmem:[#allocation10 + $0x138] sm:$0xff]  ;;  %v599_v36 = vld [vmem:[#allocation10 + $0x140] sm:$0xff] }
  0xa8   : > { %1154 = vmatpush1.bf16.msra.mxu1 %v1153_v48  ;;  %v1167_v29 = vpack.c.bf16 %v598_v28, %v596_v27  ;;  %v600_v33 = vld [vmem:[#allocation10 + $0x148] sm:$0xff]  ;;  %v602_v34 = vld [vmem:[#allocation10 + $0x158] sm:$0xff]  ;;  %v605_v43 = vld [vmem:[#allocation10 + $0x170] sm:$0xff] }
  0xa9   : > { %1102 = vmatpush1.bf16.msra.mxu0 %v1101_v13  ;;  %1156 = vmatprep.subr.bf16.mxu1 %v1155_v51  ;;  %v436_v13 = vld [vmem:[#allocation8 + $0x1d0] sm:$0xff]  ;;  %v1171_v35 = vpack.c.bf16 %v602_v34, %v600_v33  ;;  %v604_v39 = vld [vmem:[#allocation10 + $0x168] sm:$0xff]  ;;  %v606_v40 = vld [vmem:[#allocation10 + $0x178] sm:$0xff] }
  0xaa   : > { %1104 = vmatprep.subr.bf16.mxu0 %v1103_v18  ;;  %v1125_v16 = vpack.c.bf16 %v436_v13, %v434_v12  ;;  %v438_v18 = vld [vmem:[#allocation8 + $0x1e0] sm:$0xff]  ;;  %v1175_v41 = vpack.c.bf16 %v606_v40, %v604_v39  ;;  %v608_v45 = vld [vmem:[#allocation10 + $0x188] sm:$0xff]  ;;  %v610_v46 = vld [vmem:[#allocation10 + $0x198] sm:$0xff] }
  0xab   : > { %v1129_v20 = vpack.c.bf16 %v440_v19, %v438_v18  ;;  %v1179_v47 = vpack.c.bf16 %v610_v46, %v608_v45  ;;  %v607_v48 = vld [vmem:[#allocation10 + $0x180] sm:$0xff]  ;;  %v612_v51 = vld [vmem:[#allocation10 + $0x1a8] sm:$0xff]  ;;  %v614_v52 = vld [vmem:[#allocation10 + $0x1b8] sm:$0xff] }
  0xac   : > { %1158 = vmatpush1.bf16.msra.mxu1 %v1157_v60  ;;  %v1183_v53 = vpack.c.bf16 %v614_v52, %v612_v51  ;;  %v613_v55 = vld [vmem:[#allocation10 + $0x1b0] sm:$0xff]  ;;  %v616_v57 = vld [vmem:[#allocation10 + $0x1c8] sm:$0xff]  ;;  %v618_v58 = vld [vmem:[#allocation10 + $0x1d8] sm:$0xff] }
  0xad   : > { %1106 = vmatpush1.bf16.msra.mxu0 %v1105_v25  ;;  %1160 = vmatprep.subr.bf16.mxu1 %v1159_v63  ;;  %v593_v25 = vld [vmem:[#allocation10 + $0x110] sm:$0xff]  ;;  %v1187_v59 = vpack.c.bf16 %v618_v58, %v616_v57  ;;  %v615_v60 = vld [vmem:[#allocation10 + $0x1c0] sm:$0xff]  ;;  %v620_v63 = vld [vmem:[#allocation10 + $0x1e8] sm:$0xff] }
  0xae   : > { %1108 = vmatprep.subr.bf16.mxu0 %v1107_v30  ;;  %v1165_v26 = vpack.c.bf16 %v593_v25, %v591_v24  ;;  %v595_v30 = vld [vmem:[#allocation10 + $0x120] sm:$0xff]  ;;  %v622_v0 = vld [vmem:[#allocation10 + $0x1f8] sm:$0xff]  ;;  %v621_v3 = vld [vmem:[#allocation10 + $0x1f0] sm:$0xff] }
  0xaf   : > { %v1169_v32 = vpack.c.bf16 %v597_v31, %v595_v30  ;;  %v1191_v1 = vpack.c.bf16 %v622_v0, %v620_v63  ;;  %v556_v30 = vld [vmem:[#allocation3 + $0x8] sm:$0xff] }
  0xb0   : > { %1162 = vmatpush1.bf16.msra.mxu1 %v1161_v8 }
  0xb1   : > { %1110 = vmatpush1.bf16.msra.mxu0 %v1109_v37  ;;  %1164 = vmatprep.subr.bf16.mxu1 %v1163_v10  ;;  %v601_v37 = vld [vmem:[#allocation10 + $0x150] sm:$0xff] }
  0xb2   : > { %1112 = vmatprep.subr.bf16.mxu0 %v1111_v42  ;;  %v1173_v38 = vpack.c.bf16 %v601_v37, %v599_v36  ;;  %v603_v42 = vld [vmem:[#allocation10 + $0x160] sm:$0xff]  ;;  %v558_v36 = vld [vmem:[#allocation3 + $0x18] sm:$0xff] }
  0xb3   : > { %v1177_v44 = vpack.c.bf16 %v605_v43, %v603_v42 }
  0xb4   : > { %1166 = vmatpush1.bf16.msra.mxu1 %v1165_v26 }
  0xb5   : > { %1114 = vmatpush1.bf16.msra.mxu0 %v1113_v49  ;;  %1168 = vmatprep.subr.bf16.mxu1 %v1167_v29  ;;  %v609_v49 = vld [vmem:[#allocation10 + $0x190] sm:$0xff]  ;;  %v555_v29 = vld [vmem:[#allocation3] sm:$0xff] }
  0xb6   : > { %1116 = vmatprep.subr.bf16.mxu0 %v1115_v54  ;;  %v1181_v50 = vpack.c.bf16 %v609_v49, %v607_v48  ;;  %v611_v54 = vld [vmem:[#allocation10 + $0x1a0] sm:$0xff] }
  0xb7   : > { %v1185_v56 = vpack.c.bf16 %v613_v55, %v611_v54 }
  0xb8   : > { %1170 = vmatpush1.bf16.msra.mxu1 %v1169_v32 }
  0xb9   : > { %1118 = vmatpush1.bf16.msra.mxu0 %v1117_v61  ;;  %1172 = vmatprep.subr.bf16.mxu1 %v1171_v35  ;;  %v617_v61 = vld [vmem:[#allocation10 + $0x1d0] sm:$0xff] }
  0xba   : > { %1120 = vmatprep.subr.bf16.mxu0 %v1119_v2  ;;  %v1189_v62 = vpack.c.bf16 %v617_v61, %v615_v60  ;;  %v619_v2 = vld [vmem:[#allocation10 + $0x1e0] sm:$0xff]  ;;  %v557_v35 = vld [vmem:[#allocation3 + $0x10] sm:$0xff] }
  0xbb   : > { %v1193_v4 = vpack.c.bf16 %v621_v3, %v619_v2 }
  0xbc   : > { %1174 = vmatpush1.bf16.msra.mxu1 %v1173_v38 }
  0xbd   : > { %1122 = vmatpush1.bf16.msra.mxu0 %v1121_v9  ;;  %1176 = vmatprep.subr.bf16.mxu1 %v1175_v41 }
  0xbe   : > { %1124 = vmatprep.subr.bf16.mxu0 %v1123_v11 }
  0xc0   : > { %1178 = vmatpush1.bf16.msra.mxu1 %v1177_v44 }
  0xc1   : > { %1126 = vmatpush1.bf16.msra.mxu0 %v1125_v16  ;;  %1180 = vmatprep.subr.bf16.mxu1 %v1179_v47 }
  0xc2   : > { %1128 = vmatprep.subr.bf16.mxu0 %v1127_v17 }
  0xc4   : > { %1182 = vmatpush1.bf16.msra.mxu1 %v1181_v50 }
  0xc5   : > { %1130 = vmatpush1.bf16.msra.mxu0 %v1129_v20  ;;  %1184 = vmatprep.subr.bf16.mxu1 %v1183_v53 }
  0xc8   : > { %507 = vmatmul.mubr.f32.vlgmr.msra.gmra.mrb[0].mxu0 %v374_v21  ;;  %1186 = vmatpush1.bf16.msra.mxu1 %v1185_v56 }
  0xc9   : > { %512 = vmatprep.mubr.f32.mxu0 %v377_v22  ;;  %1188 = vmatprep.subr.bf16.mxu1 %v1187_v59 }
  0xcc   : > { %513 = vmatmul.mubr.f32.gmra.mrb[2].mxu0 %v376_v23  ;;  %1190 = vmatpush1.bf16.msra.mxu1 %v1189_v62 }
  0xcd   : > { %1192 = vmatprep.subr.bf16.mxu1 %v1191_v1 }
  0xd0   : > { %1194 = vmatpush1.bf16.msra.mxu1 %v1193_v4 }
 0x19b   : > { %v508_v5 = vpop.f32.mrb[0].mxu0 }
 0x19c   : > { %v1055_v6 = vmul.f32 -1.442695, %v508_v5  ;;  %v510_v7 = vpop.f32.mrb[1].mxu0 }
 0x19d   : > { %v1056_v8 = vmul.f32 -1.442695, %v510_v7 }
 0x19e   : > { %1371 = vpow2.f32 %v1055_v6 }
 0x19f   : > { %1373 = vpow2.f32 %v1056_v8  ;;  %v514_v9 = vpop.f32.mrb[2].mxu0 }
 0x1a0   : > { %v1057_v10 = vmul.f32 -1.442695, %v514_v9  ;;  %v516_v11 = vpop.f32.mrb[3].mxu0 }
 0x1a1   : > { %v1058_v12 = vmul.f32 -1.442695, %v516_v11 }
 0x1a2   : > { %1375 = vpow2.f32 %v1057_v10 }
 0x1a3   : > { %1377 = vpow2.f32 %v1058_v12 }
 0x1a8   : > { %v1372_v13 = vpop.eup %1371 }
 0x1a9   : > { %v1374_v14 = vpop.eup %1373  ;;  %v531_v15 = vadd.f32 1.0, %v1372_v13 }
 0x1aa   : > { %v532_v16 = vadd.f32 1.0, %v1374_v14 }
 0x1ab   : > { %1379 = vrcp.f32 %v531_v15 }
 0x1ac   : > { %v1376_v17 = vpop.eup %1375  ;;  %1381 = vrcp.f32 %v532_v16 }
 0x1ad   : > { %v1378_v18 = vpop.eup %1377  ;;  %v533_v19 = vadd.f32 1.0, %v1376_v17 }
 0x1ae   : > { %v534_v20 = vadd.f32 1.0, %v1378_v18 }
 0x1af   : > { %1383 = vrcp.f32 %v533_v19 }
 0x1b0   : > { %1385 = vrcp.f32 %v534_v20 }
 0x1b5   : > { %v1380_v21 = vpop.eup %1379 }
 0x1b6   : > { %v1382_v22 = vpop.eup %1381  ;;  %v543_v23 = vmul.f32 %v1380_v21, %v508_v5 }
 0x1b7   : > { %v544_v24 = vmul.f32 %v1382_v22, %v510_v7 }
 0x1b8   : > { %551 = vst [vmem:[#allocation2] sm:$0xff] %v543_v23 }
 0x1b9   : > { %v1384_v25 = vpop.eup %1383  ;;  %552 = vst [vmem:[#allocation2 + $0x8] sm:$0xff] %v544_v24  ;;  %687 = vmatprep.mubr.f32.mxu1 %v544_v24 }
 0x1ba   : > { %v1386_v26 = vpop.eup %1385  ;;  %v545_v27 = vmul.f32 %v1384_v25, %v514_v9  ;;  %688 = vmatmul.mubr.f32.vlgmr.msra.gmra.mrb[0].mxu1 %v543_v23 }
 0x1bb   : > { %v546_v28 = vmul.f32 %v1386_v26, %v516_v11 }
 0x1bc   : > { %553 = vst [vmem:[#allocation2 + $0x10] sm:$0xff] %v545_v27 }
 0x1bd   : > { %554 = vst [vmem:[#allocation2 + $0x18] sm:$0xff] %v546_v28  ;;  %693 = vmatprep.mubr.f32.mxu1 %v546_v28 }
 0x1be   : > { %694 = vmatmul.mubr.f32.gmra.mrb[2].mxu1 %v545_v27 }
 0x28d   : > { %v689_v31 = vpop.f32.mrb[0].mxu1 }
 0x28e   : > { %v700_v32 = vadd.f32 %v689_v31, %v555_v29  ;;  %v691_v33 = vpop.f32.mrb[1].mxu1 }
 0x28f   : > { %v701_v34 = vadd.f32 %v691_v33, %v556_v30 }
 0x290   : > { %704 = vst [vmem:[#allocation3] sm:$0xff] %v700_v32 }
 0x291   : > { %705 = vst [vmem:[#allocation3 + $0x8] sm:$0xff] %v701_v34  ;;  %v695_v37 = vpop.f32.mrb[2].mxu1 }
 0x292   : > { %v702_v38 = vadd.f32 %v695_v37, %v557_v35  ;;  %v697_v39 = vpop.f32.mrb[3].mxu1 }
 0x293   : > { %v703_v40 = vadd.f32 %v697_v39, %v558_v36 }
 0x294   : > { %706 = vst [vmem:[#allocation3 + $0x10] sm:$0xff] %v702_v38 }
 0x295   : > { %707 = vst [vmem:[#allocation3 + $0x18] sm:$0xff] %v703_v40 }
 0x296 PF: > { %p708_p1 = scmp.eq.s32.totalorder %s1555_s15, 1 }
 0x297   : > { %v1572_v41 = vmov (%p708_p1), 0.0  }
 0x298   : > { %712 = sbr.rel (!%p708_p1) target bundleno = 671 (0x29f), region = 64  ;;  %713 = vst [vmem:[#allocation4] sm:$0xff] (%p708_p1), %v1572_v41  ;;  %714 = vst [vmem:[#allocation4 + $0x8] sm:$0xff] (%p708_p1), %v1572_v41 }
 0x299   : > { %715 = vst [vmem:[#allocation4 + $0x10] sm:$0xff] (%p708_p1), %v1572_v41  ;;  %716 = vst [vmem:[#allocation4 + $0x18] sm:$0xff] (%p708_p1), %v1572_v41 }
 0x29f PF: > { %p1060_p3 = scmp.ne.s32.totalorder %s1555_s15, 1 }
 0x2a0   : > { %v743_v42 = vld [vmem:[#allocation11 + $0x8] sm:$0xff] (!%p1060_p3)  ;;  %v745_v43 = vld [vmem:[#allocation11 + $0x18] sm:$0xff] (!%p1060_p3)  ;;  %v742_v44 = vld [vmem:[#allocation11] sm:$0xff] (!%p1060_p3) }
 0x2a1   : > { %719 = sbr.rel (%p1060_p3) target bundleno = 955 (0x3bb), region = 68  ;;  %v1195_v45 = vpack.c.bf16 (!%p1060_p3), %v745_v43, %v743_v42  ;;  %v744_v46 = vld [vmem:[#allocation11 + $0x10] sm:$0xff] (!%p1060_p3)  ;;  %v747_v47 = vld [vmem:[#allocation11 + $0x28] sm:$0xff] (!%p1060_p3)  ;;  %v749_v48 = vld [vmem:[#allocation11 + $0x38] sm:$0xff] (!%p1060_p3) }
 0x2a2   : > { %v1197_v49 = vpack.c.bf16 (!%p1060_p3), %v744_v46, %v742_v44  ;;  %v1199_v50 = vpack.c.bf16 (!%p1060_p3), %v749_v48, %v747_v47  ;;  %v746_v51 = vld [vmem:[#allocation11 + $0x20] sm:$0xff] (!%p1060_p3)  ;;  %v748_v52 = vld [vmem:[#allocation11 + $0x30] sm:$0xff] (!%p1060_p3)  ;;  %v751_v53 = vld [vmem:[#allocation11 + $0x48] sm:$0xff] (!%p1060_p3) }
 0x2a3   : > { %1196 = vmatprep.subr.bf16.mxu0 (!%p1060_p3), %v1195_v45  ;;  %1259 = vmatprep.subr.bf16.mxu1 (!%p1060_p3), %v1195_v45  ;;  %v753_v54 = vld [vmem:[#allocation11 + $0x58] sm:$0xff] (!%p1060_p3)  ;;  %v1201_v55 = vpack.c.bf16 (!%p1060_p3), %v748_v52, %v746_v51  ;;  %v750_v57 = vld [vmem:[#allocation11 + $0x40] sm:$0xff] (!%p1060_p3)  ;;  %v752_v58 = vld [vmem:[#allocation11 + $0x50] sm:$0xff] (!%p1060_p3) }
 0x2a4   : > { %1198 = vmatpush1.bf16.msra.mxu0 (!%p1060_p3), %v1197_v49  ;;  %1275 = vmatpush1.bf16.msra.mxu1 (!%p1060_p3), %v1197_v49  ;;  %v1203_v56 = vpack.c.bf16 (!%p1060_p3), %v753_v54, %v751_v53  ;;  %v755_v59 = vld [vmem:[#allocation11 + $0x68] sm:$0xff] (!%p1060_p3)  ;;  %v757_v60 = vld [vmem:[#allocation11 + $0x78] sm:$0xff] (!%p1060_p3)  ;;  %v1205_v61 = vpack.c.bf16 (!%p1060_p3), %v752_v58, %v750_v57  ;;  %v754_v63 = vld [vmem:[#allocation11 + $0x60] sm:$0xff] (!%p1060_p3) }
 0x2a5   : > { %1200 = vmatprep.subr.bf16.mxu0 (!%p1060_p3), %v1199_v50  ;;  %1260 = vmatprep.subr.bf16.mxu1 (!%p1060_p3), %v1199_v50  ;;  %v1207_v62 = vpack.c.bf16 (!%p1060_p3), %v757_v60, %v755_v59  ;;  %v756_v0 = vld [vmem:[#allocation11 + $0x70] sm:$0xff] (!%p1060_p3)  ;;  %v759_v1 = vld [vmem:[#allocation11 + $0x88] sm:$0xff] (!%p1060_p3)  ;;  %v761_v2 = vld [vmem:[#allocation11 + $0x98] sm:$0xff] (!%p1060_p3) }
 0x2a6   : > { %v1209_v3 = vpack.c.bf16 (!%p1060_p3), %v756_v0, %v754_v63  ;;  %v1211_v4 = vpack.c.bf16 (!%p1060_p3), %v761_v2, %v759_v1  ;;  %v758_v5 = vld [vmem:[#allocation11 + $0x80] sm:$0xff] (!%p1060_p3)  ;;  %v760_v6 = vld [vmem:[#allocation11 + $0x90] sm:$0xff] (!%p1060_p3)  ;;  %v763_v7 = vld [vmem:[#allocation11 + $0xa8] sm:$0xff] (!%p1060_p3) }
 0x2a7   : > { %v765_v8 = vld [vmem:[#allocation11 + $0xb8] sm:$0xff] (!%p1060_p3)  ;;  %v1213_v9 = vpack.c.bf16 (!%p1060_p3), %v760_v6, %v758_v5  ;;  %v762_v11 = vld [vmem:[#allocation11 + $0xa0] sm:$0xff] (!%p1060_p3)  ;;  %v764_v12 = vld [vmem:[#allocation11 + $0xb0] sm:$0xff] (!%p1060_p3) }
 0x2a8   : > { %1202 = vmatpush1.bf16.msra.mxu0 %v1201_v55  ;;  %1276 = vmatpush1.bf16.msra.mxu1 %v1201_v55  ;;  %v1215_v10 = vpack.c.bf16 %v765_v8, %v763_v7  ;;  %v767_v13 = vld [vmem:[#allocation11 + $0xc8] sm:$0xff]  ;;  %v769_v14 = vld [vmem:[#allocation11 + $0xd8] sm:$0xff]  ;;  %v1217_v15 = vpack.c.bf16 %v764_v12, %v762_v11  ;;  %v766_v16 = vld [vmem:[#allocation11 + $0xc0] sm:$0xff] }
 0x2a9   : > { %1204 = vmatprep.subr.bf16.mxu0 %v1203_v56  ;;  %1261 = vmatprep.subr.bf16.mxu1 %v1203_v56  ;;  %v768_v17 = vld [vmem:[#allocation11 + $0xd0] sm:$0xff]  ;;  %v1219_v18 = vpack.c.bf16 %v769_v14, %v767_v13  ;;  %v771_v19 = vld [vmem:[#allocation11 + $0xe8] sm:$0xff]  ;;  %v773_v22 = vld [vmem:[#allocation11 + $0xf8] sm:$0xff] }
 0x2aa   : > { %v725_v20 = vld [vmem:[#allocation2 + $0x8] sm:$0xff]  ;;  %v727_v24 = vld [vmem:[#allocation2 + $0x18] sm:$0xff]  ;;  %v1221_v27 = vpack.c.bf16 %v768_v17, %v766_v16  ;;  %v1223_v28 = vpack.c.bf16 %v773_v22, %v771_v19  ;;  %v770_v29 = vld [vmem:[#allocation11 + $0xe0] sm:$0xff] }
 0x2ab   : > { %v731_v21 = vld [vmem:[#allocation3 + $0x8] sm:$0xff]  ;;  %v733_v25 = vld [vmem:[#allocation3 + $0x18] sm:$0xff]  ;;  %v772_v30 = vld [vmem:[#allocation11 + $0xf0] sm:$0xff] }
 0x2ac   : > { %1206 = vmatpush1.bf16.msra.mxu0 %v1205_v61  ;;  %1277 = vmatpush1.bf16.msra.mxu1 %v1205_v61  ;;  %v735_v23 = vmul.f32 %v731_v21, %v725_v20  ;;  %v737_v26 = vmul.f32 %v733_v25, %v727_v24  ;;  %v775_v31 = vld [vmem:[#allocation11 + $0x108] sm:$0xff]  ;;  %v777_v32 = vld [vmem:[#allocation11 + $0x118] sm:$0xff]  ;;  %v1225_v33 = vpack.c.bf16 %v772_v30, %v770_v29  ;;  %v774_v35 = vld [vmem:[#allocation11 + $0x100] sm:$0xff] }
 0x2ad   : > { %1208 = vmatprep.subr.bf16.mxu0 %v1207_v62  ;;  %1262 = vmatprep.subr.bf16.mxu1 %v1207_v62  ;;  %v1227_v34 = vpack.c.bf16 %v777_v32, %v775_v31  ;;  %v776_v36 = vld [vmem:[#allocation11 + $0x110] sm:$0xff]  ;;  %v779_v37 = vld [vmem:[#allocation11 + $0x128] sm:$0xff]  ;;  %v781_v38 = vld [vmem:[#allocation11 + $0x138] sm:$0xff] }
 0x2ae   : > { %870 = vmatprep.mubr.f32.mxu0 %v735_v23  ;;  %876 = vmatprep.mubr.f32.mxu1 %v737_v26  ;;  %v1229_v39 = vpack.c.bf16 %v776_v36, %v774_v35  ;;  %v1231_v40 = vpack.c.bf16 %v781_v38, %v779_v37  ;;  %v778_v41 = vld [vmem:[#allocation11 + $0x120] sm:$0xff]  ;;  %v780_v42 = vld [vmem:[#allocation11 + $0x130] sm:$0xff]  ;;  %v783_v43 = vld [vmem:[#allocation11 + $0x148] sm:$0xff] }
 0x2af   : > { %v785_v44 = vld [vmem:[#allocation11 + $0x158] sm:$0xff]  ;;  %v1233_v45 = vpack.c.bf16 %v780_v42, %v778_v41  ;;  %v782_v47 = vld [vmem:[#allocation11 + $0x140] sm:$0xff]  ;;  %v784_v48 = vld [vmem:[#allocation11 + $0x150] sm:$0xff] }
 0x2b0   : > { %1210 = vmatpush1.bf16.msra.mxu0 %v1209_v3  ;;  %1278 = vmatpush1.bf16.msra.mxu1 %v1209_v3  ;;  %v1235_v46 = vpack.c.bf16 %v785_v44, %v783_v43  ;;  %v787_v49 = vld [vmem:[#allocation11 + $0x168] sm:$0xff]  ;;  %v789_v50 = vld [vmem:[#allocation11 + $0x178] sm:$0xff]  ;;  %v1237_v51 = vpack.c.bf16 %v784_v48, %v782_v47  ;;  %v786_v53 = vld [vmem:[#allocation11 + $0x160] sm:$0xff] }
 0x2b1   : > { %1212 = vmatprep.subr.bf16.mxu0 %v1211_v4  ;;  %1263 = vmatprep.subr.bf16.mxu1 %v1211_v4  ;;  %v1239_v52 = vpack.c.bf16 %v789_v50, %v787_v49  ;;  %v788_v54 = vld [vmem:[#allocation11 + $0x170] sm:$0xff]  ;;  %v791_v55 = vld [vmem:[#allocation11 + $0x188] sm:$0xff]  ;;  %v793_v56 = vld [vmem:[#allocation11 + $0x198] sm:$0xff] }
 0x2b2   : > { %v1241_v57 = vpack.c.bf16 %v788_v54, %v786_v53  ;;  %v1243_v58 = vpack.c.bf16 %v793_v56, %v791_v55  ;;  %v790_v59 = vld [vmem:[#allocation11 + $0x180] sm:$0xff]  ;;  %v792_v60 = vld [vmem:[#allocation11 + $0x190] sm:$0xff]  ;;  %v795_v61 = vld [vmem:[#allocation11 + $0x1a8] sm:$0xff] }
 0x2b3   : > { %v797_v62 = vld [vmem:[#allocation11 + $0x1b8] sm:$0xff]  ;;  %v1245_v63 = vpack.c.bf16 %v792_v60, %v790_v59  ;;  %v794_v1 = vld [vmem:[#allocation11 + $0x1a0] sm:$0xff]  ;;  %v796_v2 = vld [vmem:[#allocation11 + $0x1b0] sm:$0xff] }
 0x2b4   : > { %1214 = vmatpush1.bf16.msra.mxu0 %v1213_v9  ;;  %1279 = vmatpush1.bf16.msra.mxu1 %v1213_v9  ;;  %v1247_v0 = vpack.c.bf16 %v797_v62, %v795_v61  ;;  %v799_v3 = vld [vmem:[#allocation11 + $0x1c8] sm:$0xff]  ;;  %v801_v4 = vld [vmem:[#allocation11 + $0x1d8] sm:$0xff]  ;;  %v1249_v5 = vpack.c.bf16 %v796_v2, %v794_v1  ;;  %v798_v7 = vld [vmem:[#allocation11 + $0x1c0] sm:$0xff] }
 0x2b5   : > { %1216 = vmatprep.subr.bf16.mxu0 %v1215_v10  ;;  %1264 = vmatprep.subr.bf16.mxu1 %v1215_v10  ;;  %v1251_v6 = vpack.c.bf16 %v801_v4, %v799_v3  ;;  %v800_v8 = vld [vmem:[#allocation11 + $0x1d0] sm:$0xff]  ;;  %v803_v9 = vld [vmem:[#allocation11 + $0x1e8] sm:$0xff]  ;;  %v805_v10 = vld [vmem:[#allocation11 + $0x1f8] sm:$0xff] }
 0x2b6   : > { %v1253_v11 = vpack.c.bf16 %v800_v8, %v798_v7  ;;  %v1255_v12 = vpack.c.bf16 %v805_v10, %v803_v9  ;;  %v802_v13 = vld [vmem:[#allocation11 + $0x1e0] sm:$0xff]  ;;  %v804_v14 = vld [vmem:[#allocation11 + $0x1f0] sm:$0xff]  ;;  %v739_v24 = vld [vmem:[#allocation4 + $0x8] sm:$0xff] }
 0x2b7   : > { %v1257_v16 = vpack.c.bf16 %v804_v14, %v802_v13  ;;  %v730_v17 = vld [vmem:[#allocation3] sm:$0xff]  ;;  %v732_v19 = vld [vmem:[#allocation3 + $0x10] sm:$0xff]  ;;  %v741_v25 = vld [vmem:[#allocation4 + $0x18] sm:$0xff] }
 0x2b8   : > { %1218 = vmatpush1.bf16.msra.mxu0 %v1217_v15  ;;  %1280 = vmatpush1.bf16.msra.mxu1 %v1217_v15  ;;  %v724_v15 = vld [vmem:[#allocation2] sm:$0xff]  ;;  %v740_v23 = vld [vmem:[#allocation4 + $0x10] sm:$0xff] }
 0x2b9   : > { %1220 = vmatprep.subr.bf16.mxu0 %v1219_v18  ;;  %1265 = vmatprep.subr.bf16.mxu1 %v1219_v18  ;;  %v726_v18 = vld [vmem:[#allocation2 + $0x10] sm:$0xff]  ;;  %v734_v20 = vmul.f32 %v730_v17, %v724_v15  ;;  %v738_v22 = vld [vmem:[#allocation4] sm:$0xff] }
 0x2ba   : > { %v736_v21 = vmul.f32 %v732_v19, %v726_v18 }
 0x2bc   : > { %1222 = vmatpush1.bf16.msra.mxu0 %v1221_v27  ;;  %1281 = vmatpush1.bf16.msra.mxu1 %v1221_v27 }
 0x2bd   : > { %1224 = vmatprep.subr.bf16.mxu0 %v1223_v28  ;;  %1266 = vmatprep.subr.bf16.mxu1 %v1223_v28 }
 0x2c0   : > { %1226 = vmatpush1.bf16.msra.mxu0 %v1225_v33  ;;  %1282 = vmatpush1.bf16.msra.mxu1 %v1225_v33 }
 0x2c1   : > { %1228 = vmatprep.subr.bf16.mxu0 %v1227_v34  ;;  %1267 = vmatprep.subr.bf16.mxu1 %v1227_v34 }
 0x2c4   : > { %1230 = vmatpush1.bf16.msra.mxu0 %v1229_v39  ;;  %1283 = vmatpush1.bf16.msra.mxu1 %v1229_v39 }
 0x2c5   : > { %1232 = vmatprep.subr.bf16.mxu0 %v1231_v40  ;;  %1268 = vmatprep.subr.bf16.mxu1 %v1231_v40 }
 0x2c8   : > { %1234 = vmatpush1.bf16.msra.mxu0 %v1233_v45  ;;  %1284 = vmatpush1.bf16.msra.mxu1 %v1233_v45 }
 0x2c9   : > { %1236 = vmatprep.subr.bf16.mxu0 %v1235_v46  ;;  %1269 = vmatprep.subr.bf16.mxu1 %v1235_v46 }
 0x2cc   : > { %1238 = vmatpush1.bf16.msra.mxu0 %v1237_v51  ;;  %1285 = vmatpush1.bf16.msra.mxu1 %v1237_v51 }
 0x2cd   : > { %1240 = vmatprep.subr.bf16.mxu0 %v1239_v52  ;;  %1270 = vmatprep.subr.bf16.mxu1 %v1239_v52 }
 0x2d0   : > { %1242 = vmatpush1.bf16.msra.mxu0 %v1241_v57  ;;  %1286 = vmatpush1.bf16.msra.mxu1 %v1241_v57 }
 0x2d1   : > { %1244 = vmatprep.subr.bf16.mxu0 %v1243_v58  ;;  %1271 = vmatprep.subr.bf16.mxu1 %v1243_v58 }
 0x2d4   : > { %1246 = vmatpush1.bf16.msra.mxu0 %v1245_v63  ;;  %1287 = vmatpush1.bf16.msra.mxu1 %v1245_v63 }
 0x2d5   : > { %1248 = vmatprep.subr.bf16.mxu0 %v1247_v0  ;;  %1272 = vmatprep.subr.bf16.mxu1 %v1247_v0 }
 0x2d8   : > { %1250 = vmatpush1.bf16.msra.mxu0 %v1249_v5  ;;  %1288 = vmatpush1.bf16.msra.mxu1 %v1249_v5 }
 0x2d9   : > { %1252 = vmatprep.subr.bf16.mxu0 %v1251_v6  ;;  %1273 = vmatprep.subr.bf16.mxu1 %v1251_v6 }
 0x2dc   : > { %1254 = vmatpush1.bf16.msra.mxu0 %v1253_v11  ;;  %1289 = vmatpush1.bf16.msra.mxu1 %v1253_v11 }
 0x2dd   : > { %1256 = vmatprep.subr.bf16.mxu0 %v1255_v12  ;;  %1274 = vmatprep.subr.bf16.mxu1 %v1255_v12 }
 0x2e0   : > { %1258 = vmatpush1.bf16.msra.mxu0 %v1257_v16  ;;  %1290 = vmatpush1.bf16.msra.mxu1 %v1257_v16 }
 0x2e3   : > { %871 = vmatmul.mubr.f32.vlgmr.msra.gmra.mrb[0].mxu0 %v734_v20  ;;  %877 = vmatmul.mubr.f32.vlgmr.msra.gmra.mrb[0].mxu1 %v736_v21 }
 0x3b6   : > { %v872_v26 = vpop.f32.mrb[0].mxu0  ;;  %v878_v27 = vpop.f32.mrb[0].mxu1 }
 0x3b7   : > { %v883_v28 = vadd.f32 %v872_v26, %v738_v22  ;;  %v885_v29 = vadd.f32 %v878_v27, %v740_v23  ;;  %v874_v30 = vpop.f32.mrb[1].mxu0  ;;  %v880_v31 = vpop.f32.mrb[1].mxu1 }
 0x3b8   : > { %v884_v32 = vadd.f32 %v874_v30, %v739_v24  ;;  %v886_v33 = vadd.f32 %v880_v31, %v741_v25 }
 0x3b9   : > { %887 = vst [vmem:[#allocation4] sm:$0xff] %v883_v28  ;;  %889 = vst [vmem:[#allocation4 + $0x10] sm:$0xff] %v885_v29 }
 0x3ba   : > { %888 = vst [vmem:[#allocation4 + $0x8] sm:$0xff] %v884_v32  ;;  %890 = vst [vmem:[#allocation4 + $0x18] sm:$0xff] %v886_v33 }
 0x3bb PF: > { %892 = sbr.rel (!%p708_p1) target bundleno = 963 (0x3c3), region = 72 }
 0x3c0   : > { %v893_v34 = vld [vmem:[#allocation4] sm:$0xff] (%p708_p1)  ;;  %v895_v36 = vld [vmem:[#allocation4 + $0x10] sm:$0xff] (%p708_p1) }
 0x3c1   : > { %v894_v35 = vld [vmem:[#allocation4 + $0x8] sm:$0xff] (%p708_p1)  ;;  %897 = vst [vmem:[#allocation13] sm:$0xff] (%p708_p1), %v893_v34  ;;  %899 = vst [vmem:[#allocation13 + $0x10] sm:$0xff] (%p708_p1), %v895_v36  ;;  %v896_v37 = vld [vmem:[#allocation4 + $0x18] sm:$0xff] (%p708_p1) }
 0x3c2   : > { %898 = vst [vmem:[#allocation13 + $0x8] sm:$0xff] %v894_v35  ;;  %900 = vst [vmem:[#allocation13 + $0x18] sm:$0xff] %v896_v37 }
 0x3c3 PF: > { %p1334_p5 = scmp.eq.s32.totalorder %s1654_s11, 1  ;;  %s1573_s7 = smov [#allocation13]  }
 0x3c4   : > { %s911_s8 = sshll.u32 %s1573_s7, 4  ;;  %s912_s8 = int_to_ptr.vmem [resolvable:$true] %s911_s8 }
 0x3c5   : > { %s1499_s13 = scalar_lea.vmem %s912_s8, 512  ;;  %p1506_p4 = scmp.lt.s32.totalorder %s912_s8, %s912_s8 }
 0x3c6   : > { %p1500_p6 = scmp.ne.s32.totalorder %s912_s8, %s1499_s13  ;;  %p1507_p7 = scmp.lt.s32.totalorder %s1499_s13, %s1499_s13 }
 0x3c8   : > { %p1501_p9 = pnand %p1500_p6, %p1334_p5  ;;  %p1508_p10 = por %p1507_p7, %p1506_p4 }
 0x3ca   : > { %p1502_p2 = pneg %p1501_p9 }
 0x3cc   : > { %p1509_p11 = pnand %p1508_p10, %p1502_p2 }
 0x3ce   : > { %1512 = shalt.err (!%p1509_p11)
}
 0x3cf   : > { %s1513_s6 = scalar_lea.hbm %s1802_s4, 512 }
 0x3d0   : > { %p1514_p12 = scmp.ne.s32.totalorder %s1802_s4, %s1513_s6  ;;  %p1519_p0 = scmp.lt.u32.totalorder %s1513_s6, %s1802_s4 }
 0x3d2   : > { %p1515_p8 = pnand %p1514_p12, %p1334_p5 }
 0x3d4   : > { %p1516_p13 = pneg %p1515_p8 }
 0x3d6   : > { %p1521_p1 = pnand %p1519_p0, %p1516_p13 }
 0x3d8   : > { %1524 = shalt.err (!%p1521_p1)
}
 0x3d9   : > { %s1574_s14 = smov 256   ;;  %s1575_s19 = smov 16  }
 0x3da   : > { %1308 = dma.vmem_to_hbm [thread:$0]  (%p1334_p5), %s912_s8, 512, %s1802_s4, [#allocation7], %s1574_s14, %s1574_s14, %s1575_s19  }
 0x3db   : > { %1550 = dma.done.wait (%p1334_p5), [#allocation7], 512  }
 0x3dc   : > { %1552 = vsyncadd (%p1334_p5), [#allocation7], 4294966784 }
 0x3dd PF: > { %s22_s17 = sadd.s32 1, %s1563_s17   ;;  %s1823_s15 = smov %s1559_s16 }
 0x3de   : > { %p19_p3 = scmp.ge.s32.totalorder %s22_s17, 4   ;;  %s1824_s16 = smov %s1826_s12 }
 0x3e0   :  { %21 = sbr.rel (!%p19_p3) target bundleno = 7 (0x7), region = 127 }
 0x3e7   :  { %927 = vsyncpa [#allocation6], 1 }
 0x3e8   :  { %929 = vsyncpa [#allocation6 + $0x1], 1 }
 0x3e9   :  { %930 = vsyncpa [#allocation9], 1 }
 0x3ea   :  { %932 = vsyncpa [#allocation9 + $0x1], 1 }
 0x3eb   :  { %933 = vsyncpa [#allocation12], 1 }
 0x3ec   :  { %935 = vsyncpa [#allocation12 + $0x1], 1 }
 0x3ed   :  { %936 = vsyncpa [#allocation7], 1 }
 0x3ee   :  { %938 = vsyncpa [#allocation7 + $0x1], 1 }

</bundles_post_ra>
